<compile_context>
chip_gen: v7x
topology: tpu7x:2x2x1
jax: 0.10.0
libtpu: 0.0.40
codegen_flags: <defaults>
</compile_context>

<pallas_src>
import functools

import jax
import jax.numpy as jnp
from jax.experimental import pallas as pl
from jax.experimental.pallas import tpu as pltpu


def _round_up(n, m):
    return ((n + m - 1) // m) * m


def _mlp_kernel(x_ref, w1_ref, b1_ref, w2_ref, b2_ref, w3_ref, b3_ref, o_ref):
    # bf16 storage in HBM; upcast right after load so all VPU adds / ReLUs run
    # in f32 (v5e VPU/EUP have no bf16 support).
    x = x_ref[...].astype(jnp.float32)

    # Layer 1 (K = in_feat): a real contraction -> MXU, f32 accumulate.
    h1 = jnp.dot(x, w1_ref[...], preferred_element_type=jnp.float32) + b1_ref[...]
    h1 = jnp.maximum(h1, 0.0)

    # Layer 2 (K = 10): too shallow for the MXU -> unrolled VPU broadcast-FMAs.
    acc2 = b2_ref[...]                              # [1, 5]
    for k in range(w2_ref.shape[0]):
        acc2 = acc2 + h1[:, k:k + 1] * w2_ref[k:k + 1, :]
    h2 = jnp.maximum(acc2, 0.0)                     # [bm, 5]

    # Layer 3 (K = 5): same trick, widening back to in_feat lanes.
    acc3 = b3_ref[...]                              # [1, in_feat]
    for k in range(w3_ref.shape[0]):
        acc3 = acc3 + h2[:, k:k + 1] * w3_ref[k:k + 1, :]
    out = jnp.maximum(acc3, 0.0)                    # [bm, in_feat]

    o_ref[...] = out.astype(o_ref.dtype)


@functools.partial(jax.jit, static_argnames=("block_b",))
def reg_model2_forward(x, params, block_b=1024):
    """x: [B, in_feat] float32. Returns bf16 [B, in_feat] (storage dtype)."""
    B, in_feat = x.shape
    w1, b1 = params["w1"], params["b1"]   # [in_feat, 10], [1, 10]
    w2, b2 = params["w2"], params["b2"]   # [10, 5],       [1, 5]
    w3, b3 = params["w3"], params["b3"]   # [5, in_feat],  [1, in_feat]

    # Large batch tiles (per-grid-step overhead ~0.35us), rounded up to 8 rows.
    # Keep at least 2 grid steps when B allows so v7x's 2 TensorCores both get
    # work on the "parallel" axis.  A (1024, 400) bf16 tile is ~0.8 MB, so the
    # default scoped-VMEM limits are fine on every generation.
    bm = min(block_b, _round_up(B, 8))
    if B > 8 and pl.cdiv(B, bm) < 2:
        bm = _round_up(pl.cdiv(B, 2), 8)
    grid = (pl.cdiv(B, bm),)

    # bf16 storage for the big arrays; weights/biases are tiny, keep them f32.
    x_bf16 = x.astype(jnp.bfloat16)

    full = lambda a: pl.BlockSpec(a.shape, lambda i: (0,) * a.ndim)

    out = pl.pallas_call(
        _mlp_kernel,
        out_shape=jax.ShapeDtypeStruct((B, in_feat), jnp.bfloat16),
        grid=grid,
        in_specs=[
            pl.BlockSpec((bm, in_feat), lambda i: (i, 0)),
            full(w1), full(b1),
            full(w2), full(b2),
            full(w3), full(b3),
        ],
        out_specs=pl.BlockSpec((bm, in_feat), lambda i: (i, 0)),
        compiler_params=pltpu.CompilerParams(
            dimension_semantics=("parallel",),
        ),
    )(x_bf16, w1, b1, w2, b2, w3, b3)
    return out


def init_params(key, in_feat=400, dtype=jnp.float32):
    """Deterministic init mirroring nn.Linear's U(-1/sqrt(fan_in), 1/sqrt(fan_in))."""
    dims = [(in_feat, 10), (10, 5), (5, in_feat)]
    params = {}
    keys = jax.random.split(key, 2 * len(dims))
    for idx, (fan_in, fan_out) in enumerate(dims):
        bound = 1.0 / (fan_in ** 0.5)
        w = jax.random.uniform(
            keys[2 * idx], (fan_in, fan_out), dtype, minval=-bound, maxval=bound
        )
        b = jax.random.uniform(
            keys[2 * idx + 1], (1, fan_out), dtype, minval=-bound, maxval=bound
        )
        params[f"w{idx + 1}"] = w
        params[f"b{idx + 1}"] = b
    return params


def _reference(x, params):
    h = jnp.maximum(x @ params["w1"] + params["b1"], 0.0)
    h = jnp.maximum(h @ params["w2"] + params["b2"], 0.0)
    return jnp.maximum(h @ params["w3"] + params["b3"], 0.0)


if __name__ == "__main__":
    in_feat = 400   # module default
    batch = 16      # small demo batch; wrapper splits it into 2 parallel tiles

    key = jax.random.PRNGKey(0)
    kx, kp = jax.random.split(key)
    x = jax.random.normal(kx, (batch, in_feat), jnp.float32)
    params = init_params(kp, in_feat=in_feat)

    out = reg_model2_forward(x, params)
    out = jax.block_until_ready(out)

    # Reference uses the same bf16 input quantization the kernel sees; the only
    # extra error is the bf16 output storage (~0.4% relative).
    x_q = x.astype(jnp.bfloat16).astype(jnp.float32)
    ref = _reference(x_q, params)

    assert out.shape == (batch, in_feat)
    assert out.dtype == jnp.bfloat16
    assert jnp.allclose(out.astype(jnp.float32), ref, atol=2e-2, rtol=2e-2), \
        "mismatch vs reference"

    print("KERNEL_OK")
</pallas_src>

<mosaic_0001>
module attributes {stable_mosaic.version = 11 : i64} {
  func.func @_mlp_kernel(%arg0: i32, %arg1: memref<8x400xbf16, #tpu.memory_space<vmem>>, %arg2: memref<400x10xf32, #tpu.memory_space<vmem>>, %arg3: memref<1x10xf32, #tpu.memory_space<vmem>>, %arg4: memref<10x5xf32, #tpu.memory_space<vmem>>, %arg5: memref<1x5xf32, #tpu.memory_space<vmem>>, %arg6: memref<5x400xf32, #tpu.memory_space<vmem>>, %arg7: memref<1x400xf32, #tpu.memory_space<vmem>>, %arg8: memref<8x400xbf16, #tpu.memory_space<vmem>>) attributes {dimension_semantics = [#tpu.dimension_semantics<parallel>], iteration_bounds = array<i64: 2>, scalar_prefetch = 0 : i64, scratch_operands = 0 : i64, tpu.core_type = #tpu.core_type<tc>, window_params = [{transform_indices = @transform_0, window_bounds = array<i64: 8, 400>}, {pipeline_mode = #tpu.pipeline_mode<synchronous>, transform_indices = @transform_1, window_bounds = array<i64: 400, 10>}, {pipeline_mode = #tpu.pipeline_mode<synchronous>, transform_indices = @transform_2, window_bounds = array<i64: 1, 10>}, {pipeline_mode = #tpu.pipeline_mode<synchronous>, transform_indices = @transform_3, window_bounds = array<i64: 10, 5>}, {pipeline_mode = #tpu.pipeline_mode<synchronous>, transform_indices = @transform_4, window_bounds = array<i64: 1, 5>}, {pipeline_mode = #tpu.pipeline_mode<synchronous>, transform_indices = @transform_5, window_bounds = array<i64: 5, 400>}, {pipeline_mode = #tpu.pipeline_mode<synchronous>, transform_indices = @transform_6, window_bounds = array<i64: 1, 400>}, {transform_indices = @transform_7, window_bounds = array<i64: 8, 400>}]} {
    %c0 = arith.constant 0 : index
    %c0_0 = arith.constant 0 : index
    %0 = vector.load %arg1[%c0, %c0_0] : memref<8x400xbf16, #tpu.memory_space<vmem>>, vector<8x400xbf16>
    %1 = arith.extf %0 : vector<8x400xbf16> to vector<8x400xf32>
    %c0_1 = arith.constant 0 : index
    %c0_2 = arith.constant 0 : index
    %2 = vector.load %arg2[%c0_1, %c0_2] : memref<400x10xf32, #tpu.memory_space<vmem>>, vector<400x10xf32>
    %cst = arith.constant dense<0.000000e+00> : vector<8x10xf32>
    %3 = tpu.matmul %1, %2, %cst {dimension_numbers = #tpu.dot_dimension_numbers<[1], [0], [0], [1], [0, 0, 1, 1], [], []>} : vector<8x400xf32>, vector<400x10xf32>, vector<8x10xf32> -> vector<8x10xf32>
    %c0_3 = arith.constant 0 : index
    %c0_4 = arith.constant 0 : index
    %4 = vector.load %arg3[%c0_3, %c0_4] : memref<1x10xf32, #tpu.memory_space<vmem>>, vector<1x10xf32>
    %5 = vector.broadcast %4 : vector<1x10xf32> to vector<8x10xf32>
    %6 = arith.addf %3, %5 : vector<8x10xf32>
    %cst_5 = arith.constant 0.000000e+00 : f32
    %7 = vector.broadcast %cst_5 : f32 to vector<8x10xf32>
    %8 = arith.maximumf %6, %7 : vector<8x10xf32>
    %c0_6 = arith.constant 0 : index
    %c0_7 = arith.constant 0 : index
    %9 = vector.load %arg5[%c0_6, %c0_7] : memref<1x5xf32, #tpu.memory_space<vmem>>, vector<1x5xf32>
    %10 = vector.extract_strided_slice %8 {offsets = [0, 0], sizes = [8, 1], strides = [1, 1]} : vector<8x10xf32> to vector<8x1xf32>
    %c0_8 = arith.constant 0 : index
    %c0_9 = arith.constant 0 : index
    %11 = vector.load %arg4[%c0_8, %c0_9] : memref<10x5xf32, #tpu.memory_space<vmem>>, vector<1x5xf32>
    %12 = vector.broadcast %10 : vector<8x1xf32> to vector<8x5xf32>
    %13 = vector.broadcast %11 : vector<1x5xf32> to vector<8x5xf32>
    %14 = arith.mulf %12, %13 : vector<8x5xf32>
    %15 = vector.broadcast %9 : vector<1x5xf32> to vector<8x5xf32>
    %16 = arith.addf %15, %14 : vector<8x5xf32>
    %17 = vector.extract_strided_slice %8 {offsets = [0, 1], sizes = [8, 1], strides = [1, 1]} : vector<8x10xf32> to vector<8x1xf32>
    %c1 = arith.constant 1 : index
    %c0_10 = arith.constant 0 : index
    %18 = vector.load %arg4[%c1, %c0_10] : memref<10x5xf32, #tpu.memory_space<vmem>>, vector<1x5xf32>
    %19 = vector.broadcast %17 : vector<8x1xf32> to vector<8x5xf32>
    %20 = vector.broadcast %18 : vector<1x5xf32> to vector<8x5xf32>
    %21 = arith.mulf %19, %20 : vector<8x5xf32>
    %22 = arith.addf %16, %21 : vector<8x5xf32>
    %23 = vector.extract_strided_slice %8 {offsets = [0, 2], sizes = [8, 1], strides = [1, 1]} : vector<8x10xf32> to vector<8x1xf32>
    %c2 = arith.constant 2 : index
    %c0_11 = arith.constant 0 : index
    %24 = vector.load %arg4[%c2, %c0_11] : memref<10x5xf32, #tpu.memory_space<vmem>>, vector<1x5xf32>
    %25 = vector.broadcast %23 : vector<8x1xf32> to vector<8x5xf32>
    %26 = vector.broadcast %24 : vector<1x5xf32> to vector<8x5xf32>
    %27 = arith.mulf %25, %26 : vector<8x5xf32>
    %28 = arith.addf %22, %27 : vector<8x5xf32>
    %29 = vector.extract_strided_slice %8 {offsets = [0, 3], sizes = [8, 1], strides = [1, 1]} : vector<8x10xf32> to vector<8x1xf32>
    %c3 = arith.constant 3 : index
    %c0_12 = arith.constant 0 : index
    %30 = vector.load %arg4[%c3, %c0_12] : memref<10x5xf32, #tpu.memory_space<vmem>>, vector<1x5xf32>
    %31 = vector.broadcast %29 : vector<8x1xf32> to vector<8x5xf32>
    %32 = vector.broadcast %30 : vector<1x5xf32> to vector<8x5xf32>
    %33 = arith.mulf %31, %32 : vector<8x5xf32>
    %34 = arith.addf %28, %33 : vector<8x5xf32>
    %35 = vector.extract_strided_slice %8 {offsets = [0, 4], sizes = [8, 1], strides = [1, 1]} : vector<8x10xf32> to vector<8x1xf32>
    %c4 = arith.constant 4 : index
    %c0_13 = arith.constant 0 : index
    %36 = vector.load %arg4[%c4, %c0_13] : memref<10x5xf32, #tpu.memory_space<vmem>>, vector<1x5xf32>
    %37 = vector.broadcast %35 : vector<8x1xf32> to vector<8x5xf32>
    %38 = vector.broadcast %36 : vector<1x5xf32> to vector<8x5xf32>
    %39 = arith.mulf %37, %38 : vector<8x5xf32>
    %40 = arith.addf %34, %39 : vector<8x5xf32>
    %41 = vector.extract_strided_slice %8 {offsets = [0, 5], sizes = [8, 1], strides = [1, 1]} : vector<8x10xf32> to vector<8x1xf32>
    %c5 = arith.constant 5 : index
    %c0_14 = arith.constant 0 : index
    %42 = vector.load %arg4[%c5, %c0_14] : memref<10x5xf32, #tpu.memory_space<vmem>>, vector<1x5xf32>
    %43 = vector.broadcast %41 : vector<8x1xf32> to vector<8x5xf32>
    %44 = vector.broadcast %42 : vector<1x5xf32> to vector<8x5xf32>
    %45 = arith.mulf %43, %44 : vector<8x5xf32>
    %46 = arith.addf %40, %45 : vector<8x5xf32>
    %47 = vector.extract_strided_slice %8 {offsets = [0, 6], sizes = [8, 1], strides = [1, 1]} : vector<8x10xf32> to vector<8x1xf32>
    %c6 = arith.constant 6 : index
    %c0_15 = arith.constant 0 : index
    %48 = vector.load %arg4[%c6, %c0_15] : memref<10x5xf32, #tpu.memory_space<vmem>>, vector<1x5xf32>
    %49 = vector.broadcast %47 : vector<8x1xf32> to vector<8x5xf32>
    %50 = vector.broadcast %48 : vector<1x5xf32> to vector<8x5xf32>
    %51 = arith.mulf %49, %50 : vector<8x5xf32>
    %52 = arith.addf %46, %51 : vector<8x5xf32>
    %53 = vector.extract_strided_slice %8 {offsets = [0, 7], sizes = [8, 1], strides = [1, 1]} : vector<8x10xf32> to vector<8x1xf32>
    %c7 = arith.constant 7 : index
    %c0_16 = arith.constant 0 : index
    %54 = vector.load %arg4[%c7, %c0_16] : memref<10x5xf32, #tpu.memory_space<vmem>>, vector<1x5xf32>
    %55 = vector.broadcast %53 : vector<8x1xf32> to vector<8x5xf32>
    %56 = vector.broadcast %54 : vector<1x5xf32> to vector<8x5xf32>
    %57 = arith.mulf %55, %56 : vector<8x5xf32>
    %58 = arith.addf %52, %57 : vector<8x5xf32>
    %59 = vector.extract_strided_slice %8 {offsets = [0, 8], sizes = [8, 1], strides = [1, 1]} : vector<8x10xf32> to vector<8x1xf32>
    %c8 = arith.constant 8 : index
    %c0_17 = arith.constant 0 : index
    %60 = vector.load %arg4[%c8, %c0_17] : memref<10x5xf32, #tpu.memory_space<vmem>>, vector<1x5xf32>
    %61 = vector.broadcast %59 : vector<8x1xf32> to vector<8x5xf32>
    %62 = vector.broadcast %60 : vector<1x5xf32> to vector<8x5xf32>
    %63 = arith.mulf %61, %62 : vector<8x5xf32>
    %64 = arith.addf %58, %63 : vector<8x5xf32>
    %65 = vector.extract_strided_slice %8 {offsets = [0, 9], sizes = [8, 1], strides = [1, 1]} : vector<8x10xf32> to vector<8x1xf32>
    %c9 = arith.constant 9 : index
    %c0_18 = arith.constant 0 : index
    %66 = vector.load %arg4[%c9, %c0_18] : memref<10x5xf32, #tpu.memory_space<vmem>>, vector<1x5xf32>
    %67 = vector.broadcast %65 : vector<8x1xf32> to vector<8x5xf32>
    %68 = vector.broadcast %66 : vector<1x5xf32> to vector<8x5xf32>
    %69 = arith.mulf %67, %68 : vector<8x5xf32>
    %70 = arith.addf %64, %69 : vector<8x5xf32>
    %cst_19 = arith.constant 0.000000e+00 : f32
    %71 = vector.broadcast %cst_19 : f32 to vector<8x5xf32>
    %72 = arith.maximumf %70, %71 : vector<8x5xf32>
    %c0_20 = arith.constant 0 : index
    %c0_21 = arith.constant 0 : index
    %73 = vector.load %arg7[%c0_20, %c0_21] : memref<1x400xf32, #tpu.memory_space<vmem>>, vector<1x400xf32>
    %74 = vector.extract_strided_slice %72 {offsets = [0, 0], sizes = [8, 1], strides = [1, 1]} : vector<8x5xf32> to vector<8x1xf32>
    %c0_22 = arith.constant 0 : index
    %c0_23 = arith.constant 0 : index
    %75 = vector.load %arg6[%c0_22, %c0_23] : memref<5x400xf32, #tpu.memory_space<vmem>>, vector<1x400xf32>
    %76 = vector.broadcast %74 : vector<8x1xf32> to vector<8x400xf32>
    %77 = vector.broadcast %75 : vector<1x400xf32> to vector<8x400xf32>
    %78 = arith.mulf %76, %77 : vector<8x400xf32>
    %79 = vector.broadcast %73 : vector<1x400xf32> to vector<8x400xf32>
    %80 = arith.addf %79, %78 : vector<8x400xf32>
    %81 = vector.extract_strided_slice %72 {offsets = [0, 1], sizes = [8, 1], strides = [1, 1]} : vector<8x5xf32> to vector<8x1xf32>
    %c1_24 = arith.constant 1 : index
    %c0_25 = arith.constant 0 : index
    %82 = vector.load %arg6[%c1_24, %c0_25] : memref<5x400xf32, #tpu.memory_space<vmem>>, vector<1x400xf32>
    %83 = vector.broadcast %81 : vector<8x1xf32> to vector<8x400xf32>
    %84 = vector.broadcast %82 : vector<1x400xf32> to vector<8x400xf32>
    %85 = arith.mulf %83, %84 : vector<8x400xf32>
    %86 = arith.addf %80, %85 : vector<8x400xf32>
    %87 = vector.extract_strided_slice %72 {offsets = [0, 2], sizes = [8, 1], strides = [1, 1]} : vector<8x5xf32> to vector<8x1xf32>
    %c2_26 = arith.constant 2 : index
    %c0_27 = arith.constant 0 : index
    %88 = vector.load %arg6[%c2_26, %c0_27] : memref<5x400xf32, #tpu.memory_space<vmem>>, vector<1x400xf32>
    %89 = vector.broadcast %87 : vector<8x1xf32> to vector<8x400xf32>
    %90 = vector.broadcast %88 : vector<1x400xf32> to vector<8x400xf32>
    %91 = arith.mulf %89, %90 : vector<8x400xf32>
    %92 = arith.addf %86, %91 : vector<8x400xf32>
    %93 = vector.extract_strided_slice %72 {offsets = [0, 3], sizes = [8, 1], strides = [1, 1]} : vector<8x5xf32> to vector<8x1xf32>
    %c3_28 = arith.constant 3 : index
    %c0_29 = arith.constant 0 : index
    %94 = vector.load %arg6[%c3_28, %c0_29] : memref<5x400xf32, #tpu.memory_space<vmem>>, vector<1x400xf32>
    %95 = vector.broadcast %93 : vector<8x1xf32> to vector<8x400xf32>
    %96 = vector.broadcast %94 : vector<1x400xf32> to vector<8x400xf32>
    %97 = arith.mulf %95, %96 : vector<8x400xf32>
    %98 = arith.addf %92, %97 : vector<8x400xf32>
    %99 = vector.extract_strided_slice %72 {offsets = [0, 4], sizes = [8, 1], strides = [1, 1]} : vector<8x5xf32> to vector<8x1xf32>
    %c4_30 = arith.constant 4 : index
    %c0_31 = arith.constant 0 : index
    %100 = vector.load %arg6[%c4_30, %c0_31] : memref<5x400xf32, #tpu.memory_space<vmem>>, vector<1x400xf32>
    %101 = vector.broadcast %99 : vector<8x1xf32> to vector<8x400xf32>
    %102 = vector.broadcast %100 : vector<1x400xf32> to vector<8x400xf32>
    %103 = arith.mulf %101, %102 : vector<8x400xf32>
    %104 = arith.addf %98, %103 : vector<8x400xf32>
    %cst_32 = arith.constant 0.000000e+00 : f32
    %105 = vector.broadcast %cst_32 : f32 to vector<8x400xf32>
    %106 = arith.maximumf %104, %105 : vector<8x400xf32>
    %107 = arith.truncf %106 : vector<8x400xf32> to vector<8x400xbf16>
    %c0_33 = arith.constant 0 : index
    %c0_34 = arith.constant 0 : index
    %108 = vector.load %arg8[%c0_33, %c0_34] : memref<8x400xbf16, #tpu.memory_space<vmem>>, vector<8x400xbf16>
    tpu.vector_store %arg8[%c0_33, %c0_34], %107 {strides = array<i32>} : memref<8x400xbf16, #tpu.memory_space<vmem>>, vector<8x400xbf16>,
    return
  }
  func.func @transform_0(%arg0: i32) -> (i32, i32) {
    %c0_i32 = arith.constant 0 : i32
    %c0_i32_0 = arith.constant 0 : i32
    return %arg0, %c0_i32 : i32, i32
  }
  func.func @transform_1(%arg0: i32) -> (i32, i32) {
    %c0_i32 = arith.constant 0 : i32
    %c0_i32_0 = arith.constant 0 : i32
    %c0_i32_1 = arith.constant 0 : i32
    return %c0_i32, %c0_i32_0 : i32, i32
  }
  func.func @transform_2(%arg0: i32) -> (i32, i32) {
    %c0_i32 = arith.constant 0 : i32
    %c0_i32_0 = arith.constant 0 : i32
    %c0_i32_1 = arith.constant 0 : i32
    return %c0_i32, %c0_i32_0 : i32, i32
  }
  func.func @transform_3(%arg0: i32) -> (i32, i32) {
    %c0_i32 = arith.constant 0 : i32
    %c0_i32_0 = arith.constant 0 : i32
    %c0_i32_1 = arith.constant 0 : i32
    return %c0_i32, %c0_i32_0 : i32, i32
  }
  func.func @transform_4(%arg0: i32) -> (i32, i32) {
    %c0_i32 = arith.constant 0 : i32
    %c0_i32_0 = arith.constant 0 : i32
    %c0_i32_1 = arith.constant 0 : i32
    return %c0_i32, %c0_i32_0 : i32, i32
  }
  func.func @transform_5(%arg0: i32) -> (i32, i32) {
    %c0_i32 = arith.constant 0 : i32
    %c0_i32_0 = arith.constant 0 : i32
    %c0_i32_1 = arith.constant 0 : i32
    return %c0_i32, %c0_i32_0 : i32, i32
  }
  func.func @transform_6(%arg0: i32) -> (i32, i32) {
    %c0_i32 = arith.constant 0 : i32
    %c0_i32_0 = arith.constant 0 : i32
    %c0_i32_1 = arith.constant 0 : i32
    return %c0_i32, %c0_i32_0 : i32, i32
  }
  func.func @transform_7(%arg0: i32) -> (i32, i32) {
    %c0_i32 = arith.constant 0 : i32
    %c0_i32_0 = arith.constant 0 : i32
    return %arg0, %c0_i32 : i32, i32
  }
}

</mosaic_0001>

<bundles_post_ra>
// kernel: reg_model2_forward.1
= control target key start
LH: loop header
LB: loop body
LE: loop exit
PB: predicated region body
PF: predicated region fallthrough
CT: control target
= control target key end

     0   :  { %12 = vsyncpa [#allocation3], 0  ;;  %s1567_s0 = inlined_call_operand.vmem [shape: bf16[16,400], index: 0, kind: input, shape index: {}]   ;;  %s1568_s1 = inlined_call_operand.vmem [shape: f32[400,10], index: 1, kind: input, shape index: {}]   ;;  %s1569_s2 = inlined_call_operand.vmem [shape: f32[1,10], index: 2, kind: input, shape index: {}]   ;;  %s1570_s3 = inlined_call_operand.vmem [shape: f32[10,5], index: 3, kind: input, shape index: {}]   ;;  %s1571_s4 = inlined_call_operand.vmem [shape: f32[1,5], index: 4, kind: input, shape index: {}]   ;;  %s1572_s5 = inlined_call_operand.vmem [shape: f32[5,400], index: 5, kind: input, shape index: {}]   ;;  %s1573_s6 = inlined_call_operand.vmem [shape: f32[1,400], index: 6, kind: input, shape index: {}]   ;;  %s1574_s7 = inlined_call_operand.hbm [shape: bf16[16,400], index: 7, kind: output, shape index: {}]  }
   0x1   :  { %14 = vsyncpa [#allocation3 + $0x1], 0  ;;  %s1210_s24 = smov 0   ;;  %s1212_s25 = smov 0  }
   0x2   :  { %s1214_s26 = smov 0   ;;  %s1216_s27 = smov 0  }
   0x3 LB: > { %s1231_s28 = sadd.s32 4294967295, %s1156_s27   ;;  %s900_s29 = sadd.s32 4294967294, %s1156_s27   ;;  %s1156_s27 = sphi %s1216_s27, %s1580_s27   ;;  %s1152_s26 = sphi %s1214_s26, %s1579_s26   ;;  %s1148_s25 = sphi %s1212_s25, %s1578_s25   ;;  %s1144_s24 = sphi %s1210_s24, %s1577_s24  }
   0x4   : > { %s1235_s30 = sadd.s32 1, %s1156_s27   ;;  %s179_s8 = sadd.s32 1, %s1152_s26 }
   0x5   : > { %s176_s9 = ssub.s32 %s1156_s27, %s1235_s30  ;;  %p189_p0 = scmp.ne.s32.totalorder %s1152_s26, %s1148_s25 }
   0x6   : > { %p177_p1 = scmp.eq.s32.totalorder %s176_s9, 0  ;;  %p190_p2 = scmp.eq.s32.totalorder %s1231_s28, 1 }
   0x7   : > { %p195_p3 = scmp.ne.s32.totalorder %s1148_s25, %s1144_s24  ;;  %p196_p4 = scmp.eq.s32.totalorder %s900_s29, 1 }
   0x8   : > { %s1246_s10 = scalar_select %p177_p1, %s1152_s26, %s179_s8  }
   0x9   : > { %p1248_p5 = por %p190_p2, %p189_p0  ;;  %p1252_p6 = por %p196_p4, %p195_p3 }
   0xa   : > { %p903_p7 = scmp.ge.s32.totalorder %s1156_s27, 1  ;;  %p240_p8 = scmp.lt.s32.totalorder %s1156_s27, 3 }
   0xc   : > { %p241_p9 = pnand %p903_p7, %p240_p8 }
   0xd   : > { %v299_v0 = vld [vmem:[%s1568_s1 + $0x80] sm:$0xff] (!%p241_p9)  ;;  %v300_v1 = vld [vmem:[%s1568_s1 + $0x88] sm:$0xff] (!%p241_p9)  ;;  %v1158_v4 = vmov (!%p241_p9), 0.0|0.0   ;;  %v301_v10 = vld [vmem:[%s1568_s1 + $0x90] sm:$0xff] (!%p241_p9)  ;;  %p272_p10 = scmp.lt.s32.totalorder (!%p241_p9), %s1231_s28, 1  ;;  %vm340_vm0 = vcmask (!%p241_p9), 130048  }
   0xe   : > { %244 = sbr.rel (%p241_p9) target bundleno = 590 (0x24e), region = 48  ;;  %v283_v2 = vld [vmem:[%s1568_s1] sm:$0xff] (!%p241_p9)  ;;  %v970_v3 = vpack.c.bf16 (!%p241_p9), %v300_v1, %v299_v0  ;;  %1002 = vmatprep.subr.bf16.mxu1 (!%p241_p9), %v1158_v4  ;;  %v284_v5 = vld [vmem:[%s1568_s1 + $0x8] sm:$0xff] (!%p241_p9)  ;;  %v302_v11 = vld [vmem:[%s1568_s1 + $0x98] sm:$0xff] (!%p241_p9)  ;;  %s269_s16 = sand.u32 (!%p241_p9), 1, %s1148_s25   ;;  %vm822_vm1 = vcmask (!%p241_p9), 1043456  }
   0xf   : > { %v315_v6 = vld [vmem:[%s1568_s1 + $0x100] sm:$0xff] (!%p241_p9)  ;;  %v316_v7 = vld [vmem:[%s1568_s1 + $0x108] sm:$0xff] (!%p241_p9)  ;;  %v972_v8 = vpack.c.bf16 (!%p241_p9), %v284_v5, %v283_v2  ;;  %v285_v12 = vld [vmem:[%s1568_s1 + $0x10] sm:$0xff] (!%p241_p9)  ;;  %v974_v13 = vpack.c.bf16 (!%p241_p9), %v302_v11, %v301_v10  ;;  %s904_s17 = sshll.u32 (!%p241_p9), %s269_s16, 4  ;;  %vm823_vm2 = vcmask (!%p241_p9), 130052   ;;  %s1169_s9 = smov (!%p241_p9), [#allocation2]  }
  0x10   : > { %v1003_v9 = vpack.c.bf16 (!%p241_p9), %v316_v7, %v315_v6  ;;  %971 = vmatprep.subr.bf16.mxu0 (!%p241_p9), %v970_v3  ;;  %v286_v14 = vld [vmem:[%s1568_s1 + $0x18] sm:$0xff] (!%p241_p9)  ;;  %v317_v15 = vld [vmem:[%s1568_s1 + $0x110] sm:$0xff] (!%p241_p9)  ;;  %v303_v19 = vld [vmem:[%s1568_s1 + $0xa0] sm:$0xff] (!%p241_p9)  ;;  %s1098_s13 = sshll.u32 (!%p241_p9), %s1169_s9, 4  ;;  %s1099_s13 = int_to_ptr.vmem [resolvable:$false] %s1098_s13 }
  0x11   : > { %v318_v16 = vld [vmem:[%s1568_s1 + $0x118] sm:$0xff] (!%p241_p9)  ;;  %973 = vmatpush3.bf16.msra.mxu0 (!%p241_p9), %v972_v8  ;;  %v976_v17 = vpack.c.bf16 (!%p241_p9), %v286_v14, %v285_v12  ;;  %v304_v20 = vld [vmem:[%s1568_s1 + $0xa8] sm:$0xff] (!%p241_p9)  ;;  %v287_v21 = vld [vmem:[%s1568_s1 + $0x20] sm:$0xff] (!%p241_p9)  ;;  %s1100_s14 = scalar_lea.vmem (!%p241_p9), %s1099_s13, 512 }
  0x12   : > { %1004 = vmatpush1.bf16.msra.mxu1 (!%p241_p9), %v1003_v9  ;;  %v1006_v18 = vpack.c.bf16 (!%p241_p9), %v318_v16, %v317_v15  ;;  %975 = vmatprep.subr.bf16.mxu0 (!%p241_p9), %v974_v13  ;;  %v978_v22 = vpack.c.bf16 (!%p241_p9), %v304_v20, %v303_v19  ;;  %v288_v23 = vld [vmem:[%s1568_s1 + $0x28] sm:$0xff] (!%p241_p9)  ;;  %v319_v24 = vld [vmem:[%s1568_s1 + $0x120] sm:$0xff] (!%p241_p9)  ;;  %v305_v26 = vld [vmem:[%s1568_s1 + $0xb0] sm:$0xff] (!%p241_p9)  ;;  %v1159_v19 = vmov (!%p241_p9), 2   ;;  %v1160_v20 = vmov (!%p241_p9), 0  }
  0x13   : > { %1005 = vmatprep.subr.bf16.mxu1 (!%p241_p9), %v1158_v4  ;;  %v320_v25 = vld [vmem:[%s1568_s1 + $0x128] sm:$0xff] (!%p241_p9)  ;;  %v306_v27 = vld [vmem:[%s1568_s1 + $0xb8] sm:$0xff] (!%p241_p9)  ;;  %v980_v28 = vpack.c.bf16 (!%p241_p9), %v288_v23, %v287_v21  ;;  %v289_v30 = vld [vmem:[%s1568_s1 + $0x30] sm:$0xff] (!%p241_p9)  ;;  %1081 = vset.pattern.permute.xlu1 (!%p241_p9), %v1159_v19 }
  0x14   : > { %v1009_v29 = vpack.c.bf16 (!%p241_p9), %v320_v25, %v319_v24  ;;  %v982_v31 = vpack.c.bf16 (!%p241_p9), %v306_v27, %v305_v26  ;;  %v290_v32 = vld [vmem:[%s1568_s1 + $0x38] sm:$0xff] (!%p241_p9)  ;;  %v321_v33 = vld [vmem:[%s1568_s1 + $0x130] sm:$0xff] (!%p241_p9)  ;;  %v307_v35 = vld [vmem:[%s1568_s1 + $0xc0] sm:$0xff] (!%p241_p9)  ;;  %1079 = vset.pattern.permute.xlu0 (!%p241_p9), %v1160_v20 }
  0x15   : > { %s273_s8 = scalar_select %p272_p10, %s1231_s28, 1  ;;  %977 = vmatpush3.bf16.msra.mxu0 %v976_v17  ;;  %v322_v34 = vld [vmem:[%s1568_s1 + $0x138] sm:$0xff]  ;;  %v308_v36 = vld [vmem:[%s1568_s1 + $0xc8] sm:$0xff]  ;;  %v984_v37 = vpack.c.bf16 %v290_v32, %v289_v30  ;;  %v291_v39 = vld [vmem:[%s1568_s1 + $0x40] sm:$0xff]  ;;  %v1162_v30 = vmov 1   ;;  %v1164_v32 = vmov 5  }
  0x16   : > { %1007 = vmatpush1.bf16.msra.mxu1 %v1006_v18  ;;  %979 = vmatprep.subr.bf16.mxu0 %v978_v22  ;;  %v1012_v38 = vpack.c.bf16 %v322_v34, %v321_v33  ;;  %v986_v40 = vpack.c.bf16 %v308_v36, %v307_v35  ;;  %v292_v41 = vld [vmem:[%s1568_s1 + $0x48] sm:$0xff]  ;;  %v323_v42 = vld [vmem:[%s1568_s1 + $0x140] sm:$0xff]  ;;  %v309_v44 = vld [vmem:[%s1568_s1 + $0xd0] sm:$0xff]  ;;  %v1165_v33 = vmov 6   ;;  %v1166_v34 = vmov 8  }
  0x17   : > { %1008 = vmatprep.subr.bf16.mxu1 %v1158_v4  ;;  %s931_s29 = sshll.u32 %s273_s8, 4  ;;  %v324_v43 = vld [vmem:[%s1568_s1 + $0x148] sm:$0xff]  ;;  %v310_v45 = vld [vmem:[%s1568_s1 + $0xd8] sm:$0xff]  ;;  %v988_v46 = vpack.c.bf16 %v292_v41, %v291_v39  ;;  %v293_v48 = vld [vmem:[%s1568_s1 + $0x50] sm:$0xff]  ;;  %v1167_v35 = vmov 7   ;;  %v1168_v36 = vmov 9  }
  0x18   : > { %s276_s21 = scalar_lea.vmem %s1567_s0, %s931_s29  ;;  %v1015_v47 = vpack.c.bf16 %v324_v43, %v323_v42  ;;  %v294_v49 = vld [vmem:[%s1568_s1 + $0x58] sm:$0xff]  ;;  %v990_v51 = vpack.c.bf16 %v310_v45, %v309_v44  ;;  %v325_v52 = vld [vmem:[%s1568_s1 + $0x150] sm:$0xff]  ;;  %v311_v56 = vld [vmem:[%s1568_s1 + $0xe0] sm:$0xff]  ;;  %s934_s29 = sshll.u32 %s1231_s28, 8 }
  0x19   : > { %981 = vmatpush3.bf16.msra.mxu0 %v980_v28  ;;  %v277_v50 = vld [vmem:[%s276_s21] sm:$0xff]  ;;  %v326_v53 = vld [vmem:[%s1568_s1 + $0x158] sm:$0xff]  ;;  %v278_v55 = vld [vmem:[%s276_s21 + $0x8] sm:$0xff]  ;;  %v992_v59 = vpack.c.bf16 %v294_v49, %v293_v48  ;;  %s271_s8 = scalar_lea.vmem [#allocation2], %s904_s17  ;;  %s1523_s22 = scalar_lea.hbm %s1574_s7, %s934_s29 }
  0x1a   : > { %1010 = vmatpush1.bf16.msra.mxu1 %v1009_v29  ;;  %983 = vmatprep.subr.bf16.mxu0 %v982_v31  ;;  %v280_v54 = vunpack.c.h.bf16 %v277_v50  ;;  %v312_v57 = vld [vmem:[%s1568_s1 + $0xe8] sm:$0xff]  ;;  %v282_v58 = vunpack.c.h.bf16 %v278_v55  ;;  %v1018_v60 = vpack.c.bf16 %v326_v53, %v325_v52  ;;  %v295_v61 = vld [vmem:[%s1568_s1 + $0x60] sm:$0xff]  ;;  %v313_v2 = vld [vmem:[%s1568_s1 + $0xf0] sm:$0xff]  ;;  %v279_v16 = vunpack.c.l.bf16 %v277_v50  ;;  %s841_s18 = sshll.u32 %s271_s8, 4  ;;  %s827_s28 = scalar_lea.sflag [#allocation3], %s269_s16  ;;  %s1525_s18 = int_to_ptr.vmem [resolvable:$true] %s841_s18 }
  0x1b   : > { %1011 = vmatprep.subr.bf16.mxu1 %v1158_v4  ;;  %v994_v62 = vpack.c.bf16 %v312_v57, %v311_v56  ;;  %v296_v63 = vld [vmem:[%s1568_s1 + $0x68] sm:$0xff]  ;;  %v327_v0 = vld [vmem:[%s1568_s1 + $0x160] sm:$0xff]  ;;  %v314_v3 = vld [vmem:[%s1568_s1 + $0xf8] sm:$0xff]  ;;  %v281_v18 = vunpack.c.l.bf16 %v278_v55  ;;  %v1161_v29 = vmov 3   ;;  %v1163_v31 = vmov 4   ;;  %s1094_s23 = scalar_lea.vmem %s1525_s18, 256  ;;  %p1101_p0 = scmp.lt.s32.totalorder %s1525_s18, %s1099_s13 }
  0x1c   : > { %408 = vmatprep.mubr.f32.mxu0 %v280_v54  ;;  %v328_v1 = vld [vmem:[%s1568_s1 + $0x168] sm:$0xff]  ;;  %908 = vmatprep.mubr.msk.f32.mxu1 %vm340_vm0, %v282_v58  ;;  %v996_v5 = vpack.c.bf16 %v296_v63, %v295_v61  ;;  %v297_v7 = vld [vmem:[%s1568_s1 + $0x70] sm:$0xff]  ;;  %v998_v8 = vpack.c.bf16 %v314_v3, %v313_v2  ;;  %v298_v9 = vld [vmem:[%s1568_s1 + $0x78] sm:$0xff]  ;;  %p1095_p11 = scmp.ne.s32.totalorder %s1525_s18, %s1094_s23  ;;  %p1102_p1 = scmp.lt.s32.totalorder %s1100_s14, %s1094_s23 }
  0x1d   : > { %985 = vmatpush3.bf16.msra.mxu0 %v984_v37  ;;  %v1021_v6 = vpack.c.bf16 %v328_v1, %v327_v0  ;;  %v329_v10 = vld [vmem:[%s1568_s1 + $0x170] sm:$0xff]  ;;  %v330_v11 = vld [vmem:[%s1568_s1 + $0x178] sm:$0xff]  ;;  %v1000_v12 = vpack.c.bf16 %v298_v9, %v297_v7  ;;  %v331_v14 = vld [vmem:[%s1568_s1 + $0x180] sm:$0xff] }
  0x1e   : > { %1013 = vmatpush1.bf16.msra.mxu1 %v1012_v38  ;;  %987 = vmatprep.subr.bf16.mxu0 %v986_v40  ;;  %v1024_v13 = vpack.c.bf16 %v330_v11, %v329_v10  ;;  %v332_v15 = vld [vmem:[%s1568_s1 + $0x188] sm:$0xff]  ;;  %v907_v23 = vld [vmem:[%s1569_s2] ss:$0 sm:$0xff]  ;;  %v911_v42 = vld [vmem:[%s1570_s3 + $0x1] ss:$0 sm:$0xff]  ;;  %p1096_p12 = pnand %p1095_p11, %p1248_p5  ;;  %p1103_p2 = por %p1102_p1, %p1101_p0 }
  0x1f   : > { %1014 = vmatprep.subr.bf16.mxu1 %v1158_v4  ;;  %v1027_v17 = vpack.c.bf16 %v332_v15, %v331_v14  ;;  %v909_v37 = vld [vmem:[%s1570_s3] ss:$0 sm:$0xff]  ;;  %v912_v43 = vld [vmem:[%s1570_s3 + $0x2] ss:$0 sm:$0xff]  ;;  %v913_v48 = vld [vmem:[%s1570_s3 + $0x3] ss:$0 sm:$0xff] }
  0x20   : > { %v910_v41 = vld [vmem:[%s1571_s4] ss:$0 sm:$0xff]  ;;  %v915_v57 = vld [vmem:[%s1570_s3 + $0x5] ss:$0 sm:$0xff]  ;;  %v917_v1 = vld [vmem:[%s1570_s3 + $0x7] ss:$0 sm:$0xff]  ;;  %p1097_p13 = pneg %p1096_p12 }
  0x21   : > { %989 = vmatpush3.bf16.msra.mxu0 %v988_v46  ;;  %v918_v2 = vld [vmem:[%s1570_s3 + $0x8] ss:$0 sm:$0xff]  ;;  %v919_v10 = vld [vmem:[%s1570_s3 + $0x9] ss:$0 sm:$0xff]  ;;  %vm824_vm3 = vmor %vm823_vm2, %vm822_vm1 }
  0x22   : > { %1016 = vmatpush1.bf16.msra.mxu1 %v1015_v47  ;;  %991 = vmatprep.subr.bf16.mxu0 %v990_v51  ;;  %v914_v51 = vld [vmem:[%s1570_s3 + $0x4] ss:$0 sm:$0xff]  ;;  %p1104_p3 = pnand %p1103_p2, %p1097_p13 }
  0x23   : > { %1017 = vmatprep.subr.bf16.mxu1 %v1158_v4 }
  0x25   : > { %993 = vmatpush3.bf16.msra.mxu0 %v992_v59 }
  0x26   : > { %1019 = vmatpush1.bf16.msra.mxu1 %v1018_v60  ;;  %995 = vmatprep.subr.bf16.mxu0 %v994_v62  ;;  %v916_v60 = vld [vmem:[%s1570_s3 + $0x6] ss:$0 sm:$0xff] }
  0x27   : > { %1020 = vmatprep.subr.bf16.mxu1 %v1158_v4 }
  0x29   : > { %997 = vmatpush3.bf16.msra.mxu0 %v996_v5 }
  0x2a   : > { %1022 = vmatpush1.bf16.msra.mxu1 %v1021_v6  ;;  %999 = vmatprep.subr.bf16.mxu0 %v998_v8 }
  0x2b   : > { %1023 = vmatprep.subr.bf16.mxu1 %v1158_v4 }
  0x2d   : > { %1001 = vmatpush3.bf16.msra.mxu0 %v1000_v12 }
  0x2e   : > { %1025 = vmatpush1.bf16.msra.mxu1 %v1024_v13 }
  0x2f   : > { %1026 = vmatprep.subr.bf16.mxu1 %v1158_v4 }
  0x30   : > { %409 = vmatmul.mubr.f32.vlgmr.msra.gmra.mrb[0].mxu0 %v279_v16  ;;  %v612_v16 = vlaneseq }
  0x32   : > { %1028 = vmatpush1.bf16.msra.mxu1 %v1027_v17  ;;  %v613_v17 = vshrl.u32 %v612_v16, 7 }
  0x35   : > { %479 = vmatmul.mubr.f32.vlgmr.msra.gmra.mrb[0].mxu1 %v281_v18  ;;  %v1466_v18 = vsub.s32 0, %v613_v17 }
 0x103   : > { %v967_v21 = vpop.f32.mrb[0].mxu0 }
 0x104   : > { %v968_v22 = vpop.f32.mrb[1].mxu0 }
 0x105   : > { %v969_v24 = vadd.f32 %v968_v22, %v967_v21  ;;  %v1470_v21 = vsub.s32 2, %v613_v17  ;;  %v1472_v22 = vsub.s32 3, %v613_v17 }
 0x107   : > { %v411_v25 = vadd.f32 %v969_v24, %v907_v23  ;;  %v605_v23 = vld [vmem:[%s1572_s5] ss:$8 sm:$0xf] }
 0x108   : > { %v480_v26 = vpop.f32.mrb[0].mxu1  ;;  %v604_v24 = vld [vmem:[%s1573_s6] sm:$0xf] }
 0x109   : > { %v482_v27 = vpop.f32.mrb[1].mxu1  ;;  %v481_v4 = vadd.f32 %v480_v26, %v411_v25  ;;  %v615_v25 = vrot.slane %v605_v23, %v1466_v18 }
 0x10a   : > { %v623_v27 = vrot.slane %v605_v23, %v1470_v21 }
 0x10b   : > { %v484_v28 = vmax.f32 %v481_v4, 0.0  ;;  %v627_v4 = vrot.slane %v605_v23, %v1472_v22 }
 0x10d   : > { %517 = vperm.xlu1 %1081, %v484_v28   ;;  %489 = vperm.xlu0 %1079, %v484_v28  }
 0x111   : > { %1082 = vset.pattern.permute.xlu1 %v1161_v29  ;;  %1080 = vset.pattern.permute.xlu0 %v1162_v30 }
 0x112   : > { %528 = vperm.xlu1 %1082, %v484_v28   ;;  %506 = vperm.xlu0 %1080, %v484_v28  }
 0x116   : > { %1083 = vset.pattern.permute.xlu1 %v1163_v31  ;;  %1084 = vset.pattern.permute.xlu0 %v1164_v32 }
 0x117   : > { %539 = vperm.xlu1 %1083, %v484_v28   ;;  %550 = vperm.xlu0 %1084, %v484_v28  }
 0x11b   : > { %1085 = vset.pattern.permute.xlu1 %v1165_v33  ;;  %1087 = vset.pattern.permute.xlu0 %v1166_v34  ;;  %v640_v33 = vrot.slane %v604_v24, %v1466_v18 }
 0x11c   : > { %561 = vperm.xlu1 %1085, %v484_v28   ;;  %583 = vperm.xlu0 %1087, %v484_v28  }
 0x120   : > { %1086 = vset.pattern.permute.xlu1 %v1167_v35  ;;  %1090 = vset.pattern.permute.xlu0 %v1162_v30  ;;  %v648_v35 = vrot.slane %v604_v24, %v1470_v21 }
 0x121   : > { %572 = vperm.xlu1 %1086, %v484_v28  }
 0x125   : > { %1088 = vset.pattern.permute.xlu1 %v1168_v36  ;;  %v652_v36 = vrot.slane %v604_v24, %v1472_v22 }
 0x126   : > { %594 = vperm.xlu1 %1088, %v484_v28   ;;  %v923_v28 = vld [vmem:[%s1572_s5 + $0x4] ss:$8 sm:$0xf] }
 0x12a   : > { %1089 = vset.pattern.permute.xlu1 %v1160_v20  ;;  %v1468_v20 = vsub.s32 1, %v613_v17 }
 0x12c   : > { %v619_v26 = vrot.slane %v605_v23, %v1468_v20  ;;  %v644_v34 = vrot.slane %v604_v24, %v1468_v20 }
 0x18c   : > { %v518_v38 = vpop.permute.xlu1 %517  ;;  %v490_v39 = vpop.permute.xlu0 %489 }
 0x18d   : > { %v496_v40 = vmul.f32 %v909_v37, %v490_v39  ;;  %v524_v49 = vmul.f32 %v912_v43, %v518_v38  ;;  %v921_v38 = vld [vmem:[%s1572_s5 + $0x2] ss:$8 sm:$0xf]  ;;  %v776_v39 = vrot.slane %v923_v28, %v1466_v18 }
 0x18f   : > { %v503_v46 = vadd.f32 %v910_v41, %v496_v40  ;;  %v780_v40 = vrot.slane %v923_v28, %v1468_v20  ;;  %v784_v41 = vrot.slane %v923_v28, %v1470_v21 }
 0x191   : > { %v529_v44 = vpop.permute.xlu1 %528  ;;  %v507_v45 = vpop.permute.xlu0 %506 }
 0x192   : > { %v513_v47 = vmul.f32 %v911_v42, %v507_v45  ;;  %v535_v52 = vmul.f32 %v913_v48, %v529_v44  ;;  %v788_v42 = vrot.slane %v923_v28, %v1472_v22 }
 0x194   : > { %v514_v50 = vadd.f32 %v513_v47, %v503_v46  ;;  %v922_v47 = vld [vmem:[%s1572_s5 + $0x3] ss:$8 sm:$0xf] }
 0x196   : > { %v525_v53 = vadd.f32 %v524_v49, %v514_v50  ;;  %v540_v54 = vpop.permute.xlu1 %539  ;;  %v551_v58 = vpop.permute.xlu0 %550  ;;  %v706_v49 = vrot.slane %v921_v38, %v1466_v18  ;;  %v710_v50 = vrot.slane %v921_v38, %v1468_v20 }
 0x197   : > { %v546_v55 = vmul.f32 %v914_v51, %v540_v54  ;;  %v557_v61 = vmul.f32 %v915_v57, %v551_v58  ;;  %v714_v51 = vrot.slane %v921_v38, %v1470_v21  ;;  %v741_v58 = vrot.slane %v922_v47, %v1466_v18 }
 0x198   : > { %v536_v56 = vadd.f32 %v535_v52, %v525_v53  ;;  %v718_v52 = vrot.slane %v921_v38, %v1472_v22 }
 0x19a   : > { %v547_v59 = vadd.f32 %v546_v55, %v536_v56 }
 0x19b   : > { %v562_v62 = vpop.permute.xlu1 %561  ;;  %v584_v3 = vpop.permute.xlu0 %583 }
 0x19c   : > { %v558_v63 = vadd.f32 %v557_v61, %v547_v59  ;;  %v568_v0 = vmul.f32 %v916_v60, %v562_v62  ;;  %v590_v8 = vmul.f32 %v918_v2, %v584_v3  ;;  %v745_v59 = vrot.slane %v922_v47, %v1468_v20 }
 0x19d   : > { %v749_v60 = vrot.slane %v922_v47, %v1470_v21  ;;  %v753_v61 = vrot.slane %v922_v47, %v1472_v22 }
 0x19e   : > { %v569_v6 = vadd.f32 %v568_v0, %v558_v63 }
 0x1a0   : > { %v573_v5 = vpop.permute.xlu1 %572 }
 0x1a1   : > { %v579_v7 = vmul.f32 %v917_v1, %v573_v5 }
 0x1a3   : > { %v580_v9 = vadd.f32 %v579_v7, %v569_v6 }
 0x1a5   : > { %v595_v11 = vpop.permute.xlu1 %594  ;;  %v591_v12 = vadd.f32 %v590_v8, %v580_v9 }
 0x1a6   : > { %v601_v13 = vmul.f32 %v919_v10, %v595_v11 }
 0x1a8   : > { %v602_v14 = vadd.f32 %v601_v13, %v591_v12 }
 0x1aa   : > { %v603_v15 = vmax.f32 %v602_v14, 0.0 }
 0x1ac   : > { %664 = vperm.xlu0 %1090, %v603_v15   ;;  %608 = vperm.xlu1 %1089, %v603_v15  }
 0x1b0   : > { %1093 = vset.pattern.permute.xlu0 %v1163_v31  ;;  %1091 = vset.pattern.permute.xlu1 %v1159_v19  ;;  %v920_v19 = vld [vmem:[%s1572_s5 + $0x1] ss:$8 sm:$0xf] }
 0x1b1   : > { %769 = vperm.xlu0 %1093, %v603_v15   ;;  %699 = vperm.xlu1 %1091, %v603_v15   ;;  %v675_v30 = vrot.slane %v920_v19, %v1468_v20  ;;  %v679_v31 = vrot.slane %v920_v19, %v1470_v21  ;;  %v683_v32 = vrot.slane %v920_v19, %v1472_v22 }
 0x1b5   : > { %1092 = vset.pattern.permute.xlu1 %v1161_v29  ;;  %v671_v29 = vrot.slane %v920_v19, %v1466_v18 }
 0x1b6   : > { %734 = vperm.xlu1 %1092, %v603_v15  }
 0x22b   : > { %v609_v37 = vpop.permute.xlu1 %608  ;;  %v665_v48 = vpop.permute.xlu0 %664 }
 0x22c   : > { %v632_v43 = vmul.f32 %v615_v25, %v609_v37  ;;  %v633_v44 = vmul.f32 %v619_v26, %v609_v37  ;;  %v634_v45 = vmul.f32 %v623_v27, %v609_v37  ;;  %v635_v46 = vmul.f32 %v627_v4, %v609_v37 }
 0x22d   : > { %v688_v62 = vmul.f32 %v671_v29, %v665_v48  ;;  %v689_v63 = vmul.f32 %v675_v30, %v665_v48  ;;  %v690_v0 = vmul.f32 %v679_v31, %v665_v48  ;;  %v691_v1 = vmul.f32 %v683_v32, %v665_v48 }
 0x22e   : > { %v657_v53 = vadd.f32 %v640_v33, %v632_v43  ;;  %v658_v54 = vadd.f32 %v644_v34, %v633_v44  ;;  %v659_v55 = vadd.f32 %v648_v35, %v634_v45  ;;  %v660_v56 = vadd.f32 %v652_v36, %v635_v46 }
 0x230   : > { %v700_v57 = vpop.permute.xlu1 %699  ;;  %v692_v7 = vadd.f32 %v688_v62, %v657_v53  ;;  %v693_v8 = vadd.f32 %v689_v63, %v658_v54  ;;  %v694_v9 = vadd.f32 %v690_v0, %v659_v55  ;;  %v695_v10 = vadd.f32 %v691_v1, %v660_v56  ;;  %v770_v11 = vpop.permute.xlu0 %769 }
 0x231   : > { %v723_v2 = vmul.f32 %v706_v49, %v700_v57  ;;  %v724_v3 = vmul.f32 %v710_v50, %v700_v57  ;;  %v725_v5 = vmul.f32 %v714_v51, %v700_v57  ;;  %v726_v6 = vmul.f32 %v718_v52, %v700_v57 }
 0x232   : > { %v793_v22 = vmul.f32 %v776_v39, %v770_v11  ;;  %v794_v23 = vmul.f32 %v780_v40, %v770_v11  ;;  %v795_v19 = vmul.f32 %v784_v41, %v770_v11  ;;  %v796_v24 = vmul.f32 %v788_v42, %v770_v11 }
 0x233   : > { %v727_v12 = vadd.f32 %v723_v2, %v692_v7  ;;  %v728_v13 = vadd.f32 %v724_v3, %v693_v8  ;;  %v729_v14 = vadd.f32 %v725_v5, %v694_v9  ;;  %v730_v15 = vadd.f32 %v726_v6, %v695_v10 }
 0x235   : > { %v735_v16 = vpop.permute.xlu1 %734 }
 0x236   : > { %v758_v17 = vmul.f32 %v741_v58, %v735_v16  ;;  %v759_v18 = vmul.f32 %v745_v59, %v735_v16  ;;  %v760_v20 = vmul.f32 %v749_v60, %v735_v16  ;;  %v761_v21 = vmul.f32 %v753_v61, %v735_v16 }
 0x238   : > { %v762_v25 = vadd.f32 %v758_v17, %v727_v12  ;;  %v763_v26 = vadd.f32 %v759_v18, %v728_v13  ;;  %v764_v27 = vadd.f32 %v760_v20, %v729_v14  ;;  %v765_v4 = vadd.f32 %v761_v21, %v730_v15 }
 0x23a   : > { %v797_v28 = vadd.f32 %v793_v22, %v762_v25  ;;  %v798_v29 = vadd.f32 %v794_v23, %v763_v26  ;;  %v799_v30 = vadd.f32 %v795_v19, %v764_v27  ;;  %v800_v31 = vadd.f32 %v796_v24, %v765_v4 }
 0x23c   : > { %v801_v32 = vmax.f32 %v797_v28, 0.0  ;;  %v802_v33 = vmax.f32 %v798_v29, 0.0  ;;  %v803_v34 = vmax.f32 %v799_v30, 0.0  ;;  %v804_v35 = vmax.f32 %v800_v31, 0.0 }
 0x23e   : > { %v933_v36 = vpack.c.bf16 %v804_v35, %v803_v34  ;;  %v932_v37 = vpack.c.bf16 %v802_v33, %v801_v32 }
 0x240   : > { %821 = vst [vmem:[%s271_s8] sm:$0xff] %v932_v37  ;;  %825 = vst.msk [vmem:[%s271_s8 + $0x8] sm:$0xff] %vm824_vm3, %v933_v36 }
 0x241   : > { %1107 = shalt.err (!%p1104_p3)
}
 0x242   : > { %s1108_s21 = scalar_lea.hbm %s1523_s22, 256  ;;  %s1112_s17 = scalar_lea.hbm %s1574_s7, 512 }
 0x243   : > { %p1109_p4 = scmp.ne.s32.totalorder %s1523_s22, %s1108_s21  ;;  %p1113_p9 = scmp.lt.u32.totalorder %s1523_s22, %s1574_s7 }
 0x244   : > { %p1114_p10 = scmp.lt.u32.totalorder %s1112_s17, %s1108_s21  ;;  %p1116_p12 = scmp.lt.u32.totalorder %s1108_s21, %s1523_s22 }
 0x245   : > { %p1110_p7 = pnand %p1109_p4, %p1248_p5 }
 0x246   : > { %p1115_p11 = por %p1114_p10, %p1113_p9 }
 0x247   : > { %p1111_p8 = pneg %p1110_p7 }
 0x248   : > { %p1117_p13 = por %p1116_p12, %p1115_p11 }
 0x24a   : > { %p1118_p0 = pnand %p1117_p13, %p1111_p8 }
 0x24c   : > { %1121 = shalt.err (!%p1118_p0)
}
 0x24d   : > { %1029 = dma.vmem_to_hbm [thread:$0]  (%p1248_p5), %s1525_s18, 256, %s1523_s22, %s827_s28  }
 0x24e PF: > { %p1035_p1 = scmp.ge.s32.totalorder %s1156_s27, 2  ;;  %s853_s19 = sand.u32 1, %s1144_s24  }
 0x24f   : > { %s854_s20 = scalar_lea.sflag [#allocation3], %s853_s19 }
 0x250   : > { %p1032_p2 = pnand %p1035_p1, %p1252_p6 }
 0x252   : > { %1139 = dma.done.wait (!%p1032_p2), %s854_s20, 256  }
 0x253   : > { %1141 = vsyncadd (!%p1032_p2), %s854_s20, 4294967040  ;;  %p17_p3 = scmp.ge.s32.totalorder %s1235_s30, 4   ;;  %s1577_s24 = smov %s1148_s25 }
 0x254   : > { %s1578_s25 = smov %s1152_s26  ;;  %s1579_s26 = smov %s1246_s10 }
 0x255   : > { %s1580_s27 = smov %s1235_s30  ;;  %19 = sbr.rel (!%p17_p3) target bundleno = 3 (0x3), region = 87 }
 0x25c   :  { %859 = vsyncpa [#allocation3], 1 }
 0x25d   :  { %861 = vsyncpa [#allocation3 + $0x1], 1 }

</bundles_post_ra>
